<compile_context>
chip_gen: v5e
topology: v5e:2x2
jax: 0.10.0
libtpu: 0.0.40
codegen_flags: <defaults>
</compile_context>

<pallas_src>
import jax
import jax.numpy as jnp
from jax.experimental import pallas as pl
from jax.experimental.pallas import tpu as pltpu


def _agent_policy_kernel(x_ref, w1_ref, b1_ref, w2_ref, b2_ref, out_ref):
    # x: (B, 2), w1: (2, H), b1: (1, H), w2: (H, A), b2: (1, A), out: (B, A)
    x = x_ref[...]
    w1 = w1_ref[...]

    # Layer 1 on the VPU: K=2 contraction as two broadcast-FMAs (skip the MXU).
    h = (x[:, 0:1] * w1[0:1, :]
         + x[:, 1:2] * w1[1:2, :]
         + b1_ref[...])
    h = jnp.maximum(h, 0.0)  # ReLU

    # Layer 2 (K=64) on the MXU with f32 accumulation.
    y = jnp.dot(h, w2_ref[...], preferred_element_type=jnp.float32) + b2_ref[...]
    # TODO(synk): for very large B a lane-dense (transposed) output layout would
    # avoid masked 4-lane stores; negligible at these sizes.
    out_ref[...] = y.astype(out_ref.dtype)


def _forward_gridless(x, w1, b1_2d, w2, b2_2d):
    """Small-batch path: no grid, whole arrays resident in VMEM."""
    B = x.shape[0]
    A = w2.shape[1]
    vmem = pltpu.MemorySpace.VMEM
    return pl.pallas_call(
        _agent_policy_kernel,
        out_shape=jax.ShapeDtypeStruct((B, A), jnp.float32),
        in_specs=[pl.BlockSpec(memory_space=vmem)] * 5,
        out_specs=pl.BlockSpec(memory_space=vmem),
    )(x, w1, b1_2d, w2, b2_2d)


def _forward_batch_tiled(x, w1, b1_2d, w2, b2_2d, tile_b):
    """Large-batch path: tile the batch, parallel grid (uses both TCs on v7x)."""
    B, S = x.shape
    A = w2.shape[1]
    grid = (pl.cdiv(B, tile_b),)
    return pl.pallas_call(
        _agent_policy_kernel,
        out_shape=jax.ShapeDtypeStruct((B, A), jnp.float32),
        grid_spec=pltpu.PrefetchScalarGridSpec(
            num_scalar_prefetch=0,
            grid=grid,
            in_specs=[
                pl.BlockSpec((tile_b, S), lambda i: (i, 0)),
                pl.BlockSpec(w1.shape, lambda i: (0, 0)),
                pl.BlockSpec(b1_2d.shape, lambda i: (0, 0)),
                pl.BlockSpec(w2.shape, lambda i: (0, 0)),
                pl.BlockSpec(b2_2d.shape, lambda i: (0, 0)),
            ],
            out_specs=pl.BlockSpec((tile_b, A), lambda i: (i, 0)),
        ),
        compiler_params=pltpu.CompilerParams(
            dimension_semantics=("parallel",)),
    )(x, w1, b1_2d, w2, b2_2d)


def agent_policy_forward(x, w1, b1, w2, b2, *, tile_b=512):
    """x: (B, state_dim) f32. Returns (B, action_dim) f32."""
    b1_2d = b1.reshape(1, -1)
    b2_2d = b2.reshape(1, -1)
    B = x.shape[0]
    # Tiny batches: gridless single-shot kernel. Large batches: batch-tiled,
    # double-buffered, parallel grid (tile_b multiple of 8; sweep 512-2048).
    if B >= 2 * tile_b and B % tile_b == 0:
        return _forward_batch_tiled(x, w1, b1_2d, w2, b2_2d, tile_b)
    return _forward_gridless(x, w1, b1_2d, w2, b2_2d)


def init_params(key, state_dim=2, hidden=64, action_dim=4):
    """Deterministic init mirroring nn.Linear default (uniform +/- 1/sqrt(fan_in))."""
    k1, k2, k3, k4 = jax.random.split(key, 4)
    bound1 = 1.0 / jnp.sqrt(state_dim)
    bound2 = 1.0 / jnp.sqrt(hidden)
    # Stored as (in, out) so the kernel computes x @ W.
    w1 = jax.random.uniform(k1, (state_dim, hidden), jnp.float32, -bound1, bound1)
    b1 = jax.random.uniform(k2, (hidden,), jnp.float32, -bound1, bound1)
    w2 = jax.random.uniform(k3, (hidden, action_dim), jnp.float32, -bound2, bound2)
    b2 = jax.random.uniform(k4, (action_dim,), jnp.float32, -bound2, bound2)
    return w1, b1, w2, b2


if __name__ == "__main__":
    key = jax.random.PRNGKey(0)
    kx, kx2, kp = jax.random.split(key, 3)

    batch, state_dim, hidden, action_dim = 8, 2, 64, 4
    w1, b1, w2, b2 = init_params(kp, state_dim, hidden, action_dim)

    def ref_fn(xin):
        return jnp.maximum(xin @ w1 + b1, 0.0) @ w2 + b2

    # Small-batch (gridless) path.
    x_small = jax.random.normal(kx, (batch, state_dim), jnp.float32)
    out_small = jax.block_until_ready(agent_policy_forward(x_small, w1, b1, w2, b2))
    assert out_small.shape == (batch, action_dim)
    assert jnp.allclose(out_small, ref_fn(x_small), atol=1e-5, rtol=1e-5)

    # Batch-tiled (parallel-grid) path, still modest shapes.
    big_batch, tile_b = 256, 128
    x_big = jax.random.normal(kx2, (big_batch, state_dim), jnp.float32)
    out_big = jax.block_until_ready(
        agent_policy_forward(x_big, w1, b1, w2, b2, tile_b=tile_b))
    assert out_big.shape == (big_batch, action_dim)
    assert jnp.allclose(out_big, ref_fn(x_big), atol=1e-5, rtol=1e-5)

    print("KERNEL_OK")
</pallas_src>

<mosaic_0001>
module attributes {stable_mosaic.version = 11 : i64} {
  func.func @_agent_policy_kernel(%arg0: memref<8x2xf32, #tpu.memory_space<vmem>>, %arg1: memref<2x64xf32, #tpu.memory_space<vmem>>, %arg2: memref<1x64xf32, #tpu.memory_space<vmem>>, %arg3: memref<64x4xf32, #tpu.memory_space<vmem>>, %arg4: memref<1x4xf32, #tpu.memory_space<vmem>>, %arg5: memref<8x4xf32, #tpu.memory_space<vmem>>) attributes {dimension_semantics = [], scalar_prefetch = 0 : i64, scratch_operands = 0 : i64, tpu.core_type = #tpu.core_type<tc>} {
    %c0 = arith.constant 0 : index
    %c0_0 = arith.constant 0 : index
    %0 = vector.load %arg0[%c0, %c0_0] : memref<8x2xf32, #tpu.memory_space<vmem>>, vector<8x2xf32>
    %c0_1 = arith.constant 0 : index
    %c0_2 = arith.constant 0 : index
    %1 = vector.load %arg1[%c0_1, %c0_2] : memref<2x64xf32, #tpu.memory_space<vmem>>, vector<2x64xf32>
    %2 = vector.extract_strided_slice %0 {offsets = [0, 0], sizes = [8, 1], strides = [1, 1]} : vector<8x2xf32> to vector<8x1xf32>
    %3 = vector.extract_strided_slice %1 {offsets = [0, 0], sizes = [1, 64], strides = [1, 1]} : vector<2x64xf32> to vector<1x64xf32>
    %4 = vector.broadcast %2 : vector<8x1xf32> to vector<8x64xf32>
    %5 = vector.broadcast %3 : vector<1x64xf32> to vector<8x64xf32>
    %6 = arith.mulf %4, %5 : vector<8x64xf32>
    %7 = vector.extract_strided_slice %0 {offsets = [0, 1], sizes = [8, 1], strides = [1, 1]} : vector<8x2xf32> to vector<8x1xf32>
    %8 = vector.extract_strided_slice %1 {offsets = [1, 0], sizes = [1, 64], strides = [1, 1]} : vector<2x64xf32> to vector<1x64xf32>
    %9 = vector.broadcast %7 : vector<8x1xf32> to vector<8x64xf32>
    %10 = vector.broadcast %8 : vector<1x64xf32> to vector<8x64xf32>
    %11 = arith.mulf %9, %10 : vector<8x64xf32>
    %12 = arith.addf %6, %11 : vector<8x64xf32>
    %c0_3 = arith.constant 0 : index
    %c0_4 = arith.constant 0 : index
    %13 = vector.load %arg2[%c0_3, %c0_4] : memref<1x64xf32, #tpu.memory_space<vmem>>, vector<1x64xf32>
    %14 = vector.broadcast %13 : vector<1x64xf32> to vector<8x64xf32>
    %15 = arith.addf %12, %14 : vector<8x64xf32>
    %cst = arith.constant 0.000000e+00 : f32
    %16 = vector.broadcast %cst : f32 to vector<8x64xf32>
    %17 = arith.maximumf %15, %16 : vector<8x64xf32>
    %c0_5 = arith.constant 0 : index
    %c0_6 = arith.constant 0 : index
    %18 = vector.load %arg3[%c0_5, %c0_6] : memref<64x4xf32, #tpu.memory_space<vmem>>, vector<64x4xf32>
    %cst_7 = arith.constant dense<0.000000e+00> : vector<8x4xf32>
    %19 = tpu.matmul %17, %18, %cst_7 {dimension_numbers = #tpu.dot_dimension_numbers<[1], [0], [0], [1], [0, 0, 1, 1], [], []>} : vector<8x64xf32>, vector<64x4xf32>, vector<8x4xf32> -> vector<8x4xf32>
    %c0_8 = arith.constant 0 : index
    %c0_9 = arith.constant 0 : index
    %20 = vector.load %arg4[%c0_8, %c0_9] : memref<1x4xf32, #tpu.memory_space<vmem>>, vector<1x4xf32>
    %21 = vector.broadcast %20 : vector<1x4xf32> to vector<8x4xf32>
    %22 = arith.addf %19, %21 : vector<8x4xf32>
    %c0_10 = arith.constant 0 : index
    %c0_11 = arith.constant 0 : index
    %23 = vector.load %arg5[%c0_10, %c0_11] : memref<8x4xf32, #tpu.memory_space<vmem>>, vector<8x4xf32>
    tpu.vector_store %arg5[%c0_10, %c0_11], %22 {strides = array<i32>} : memref<8x4xf32, #tpu.memory_space<vmem>>, vector<8x4xf32>,
    return
  }
}

</mosaic_0001>

<bundles_post_ra>
// kernel: tpu_custom_call.1
= control target key start
LH: loop header
LB: loop body
LE: loop exit
PB: predicated region body
PF: predicated region fallthrough
CT: control target
= control target key end

     0   :  { %v91_v0 = vmov 0   ;;  %v92_v2 = vmov 1   ;;  %vm54_vm0 = vcmask 523264   ;;  %vm78_vm1 = vcmask 31744   ;;  %s162_s0 = inlined_call_operand.vmem [shape: f32[8,2], index: 0, kind: input, shape index: {}]   ;;  %s163_s2 = inlined_call_operand.vmem [shape: f32[1,64], index: 2, kind: input, shape index: {}]   ;;  %s164_s4 = inlined_call_operand.vmem [shape: f32[1,4], index: 4, kind: input, shape index: {}]   ;;  %s165_s3 = inlined_call_operand.vmem [shape: f32[64,4], index: 3, kind: input, shape index: {}]   ;;  %s166_s1 = inlined_call_operand.vmem [shape: f32[2,64], index: 1, kind: input, shape index: {}]   ;;  %s167_s5 = inlined_call_operand.vmem [shape: f32[8,4], index: 5, kind: output, shape index: {}]  }
   0x1   :  { %87 = vset.pattern.permute.xlu0 %v91_v0  ;;  %v20_v1 = vld [vmem:[%s162_s0] sm:$0xff]  ;;  %v49_v3 = vld [vmem:[%s165_s3 + $0x38] sm:$0xff]  ;;  %v48_v4 = vld [vmem:[%s165_s3 + $0x30] sm:$0xff] }
   0x2   :  { %24 = vperm.xlu0 %87, %v20_v1   ;;  %66 = vmatpush.msra.mxu0 %v49_v3  ;;  %v47_v5 = vld [vmem:[%s165_s3 + $0x28] sm:$0xff]  ;;  %v46_v6 = vld [vmem:[%s165_s3 + $0x20] sm:$0xff]  ;;  %v45_v7 = vld [vmem:[%s165_s3 + $0x18] sm:$0xff] }
   0x3   :  { %v44_v8 = vld [vmem:[%s165_s3 + $0x10] sm:$0xff]  ;;  %v43_v9 = vld [vmem:[%s165_s3 + $0x8] sm:$0xff]  ;;  %v42_v10 = vld [vmem:[%s165_s3] sm:$0xff] }
   0x4   :  { %67 = vmatpush.msra.mxu0 %v48_v4  ;;  %v21_v12 = vld [vmem:[%s166_s1] sm:$0x3] }
   0x5   :  { %v27_v13 = vperm.slane %v21_v12, 0  ;;  %v33_v14 = vperm.slane %v21_v12, 1  ;;  %v89_v18 = vld [vmem:[%s163_s2] ss:$0 sm:$0xff] }
   0x6   :  { %68 = vmatpush.msra.mxu0 %v47_v5  ;;  %v90_v22 = vld [vmem:[%s164_s4] ss:$0 sm:$0xff] }
   0x8   :  { %69 = vmatpush.msra.mxu0 %v46_v6 }
   0xa   :  { %88 = vset.pattern.permute.xlu0 %v92_v2  ;;  %70 = vmatpush.msra.mxu0 %v45_v7 }
   0xb   :  { %30 = vperm.xlu0 %88, %v20_v1  }
   0xc   :  { %71 = vmatpush.msra.mxu0 %v44_v8 }
   0xe   :  { %72 = vmatpush.msra.mxu0 %v43_v9 }
  0x10   :  { %73 = vmatpush.msra.mxu0 %v42_v10 }
  0x74   :  { %v25_v11 = vpop.permute.xlu0 %24 }
  0x75   :  { %v28_v16 = vmul.f32 %v27_v13, %v25_v11 }
  0x7d   :  { %v31_v15 = vpop.permute.xlu0 %30 }
  0x7e   :  { %v34_v17 = vmul.f32 %v33_v14, %v31_v15 }
  0x80   :  { %v35_v19 = vadd.f32 %v34_v17, %v28_v16 }
  0x82   :  { %v40_v20 = vadd.f32 %v89_v18, %v35_v19 }
  0x84   :  { %v41_v21 = vmax.f32 %v40_v20, 0.0 }
  0x86   :  { %84 = vmatmul.msk.f32.vlgmr.msra.gmra.mxu0 %vm54_vm0, %v41_v21 }
 0x103   :  { %v75_v23 = vpop.f32.mrf.mxu0 }
 0x104   :  { %v76_v24 = vadd.f32 %v90_v22, %v75_v23 }
 0x106   :  { %79 = vst.msk [vmem:[%s167_s5] sm:$0xff] %vm78_vm1, %v76_v24 }

</bundles_post_ra>
